<compile_context>
chip_gen: v7x
topology: tpu7x:2x2x1
jax: 0.10.0
libtpu: 0.0.40
codegen_flags: <defaults>
</compile_context>

<pallas_src>
import jax
import jax.numpy as jnp
from jax.experimental import pallas as pl
from jax.experimental.pallas import tpu as pltpu

B, N = 2, 128
C_IN = 3 + 16          # xyz + input_feature_dim=16
HID0 = 128             # stand-in backbone hidden width
FEAT = 512 // 2        # global feature dim = 256
LEAKY_SLOPE = 0.01     # nn.LeakyReLU() default

PTS_CHUNK = 128
N_CHUNKS = (B * N) // PTS_CHUNK

# Row offsets inside the packed bf16 weight slab.
W1_ROW = 0
WM0_ROW = HID0               # 128
WM1_ROW = HID0 + FEAT        # 384
S_ROW = HID0 + 2 * FEAT      # 640  (multiple of 16 -> aligned bf16 sublane slice)
WPACK_ROWS = S_ROW + 8       # 648


def diffusion_cond_kernel(xb_ref, w0_ref, wpack_ref, bias_ref, z_ref):
    biases = bias_ref[...]                              # (4, FEAT) f32
    b0 = biases[0:1, :HID0]                             # backbone layer-0 bias
    b1 = biases[1:2, :]                                 # backbone layer-1 bias
    bm0 = biases[2:3, :]                                # mu[0] bias
    bm1t = biases[3:4, :]                               # mu[2] bias + temp embedding

    # TODO(synk): Pointnet2Backbone (FPS / ball-query set-abstraction layers) is not
    # defined in the provided source; approximated with a shared point-wise MLP that
    # produces (B, N, 256) point features, matching the backbone's output contract.
    w0 = w0_ref[...]                                    # (C_IN, HID0) bf16
    w1 = wpack_ref[W1_ROW:W1_ROW + HID0, :]             # (HID0, FEAT) bf16

    # Backbone MLP over points, two statically-unrolled 128-point chunks.  Each
    # chunk's contribution to the (sublane-padded) global feature is accumulated
    # with a tiny segmented-mean matmul on the MXU: g += S[:, chunk] @ f_chunk.
    g = jnp.zeros((8, FEAT), jnp.float32)               # rows < B hold real features
    for c in range(N_CHUNKS):
        r0 = c * PTS_CHUNK
        xb = xb_ref[r0:r0 + PTS_CHUNK, :].astype(jnp.bfloat16)
        h = jnp.dot(xb, w0, preferred_element_type=jnp.float32) + b0
        h = jnp.maximum(h, 0.0)
        f = jnp.dot(h.astype(jnp.bfloat16), w1,
                    preferred_element_type=jnp.float32) + b1
        f = jnp.maximum(f, 0.0)                          # (128, FEAT) f32
        s_c = wpack_ref[S_ROW:S_ROW + 8, r0:r0 + PTS_CHUNK]   # (8, 128) bf16, 1/N blocks
        g = g + jnp.dot(s_c, f.astype(jnp.bfloat16),
                        preferred_element_type=jnp.float32)

    # mu = Linear(256,256) -> LeakyReLU(0.01) -> Linear(256,256); temp folded into
    # bm1t.  Operates on the padded (8, FEAT) slab; rows >= B are discarded below.
    wm0 = wpack_ref[WM0_ROW:WM0_ROW + FEAT, :]
    h1 = jnp.dot(g.astype(jnp.bfloat16), wm0,
                 preferred_element_type=jnp.float32) + bm0
    h1 = jnp.where(h1 >= 0.0, h1, LEAKY_SLOPE * h1)
    wm1 = wpack_ref[WM1_ROW:WM1_ROW + FEAT, :]
    z = jnp.dot(h1.astype(jnp.bfloat16), wm1,
                preferred_element_type=jnp.float32) + bm1t
    z_ref[...] = z[0:B, :]


def prepare_params(params):
    """One-time constant folding / packing at init time (outside the kernel)."""
    w0, b0, w1, b1, wm0, bm0, wm1, bm1, temp = params

    # All (1, F) bias vectors in one f32 slab (b0 zero-padded to FEAT lanes).
    biases = jnp.concatenate(
        [jnp.pad(b0, ((0, 0), (0, FEAT - HID0))),       # row 0: b0
         b1,                                            # row 1: b1
         bm0,                                           # row 2: bm0
         bm1 + temp],                                   # row 3: bm1 + temp (folded)
        axis=0)                                         # (4, FEAT)

    # Segmented-mean matrix: row b holds 1/N over the point columns of batch b;
    # padded to 8 rows so every MXU operand stays sublane-aligned.
    s = jnp.zeros((8, B * N), jnp.float32)
    for b in range(B):
        s = s.at[b, b * N:(b + 1) * N].set(1.0 / N)

    # Pack all bf16 matmul operands into one slab -> a single input DMA.
    # (S shares the slab because B*N == FEAT == 256 at this configuration;
    #  at other sizes S would be passed as its own small input.)
    assert B * N == FEAT
    wpack = jnp.concatenate([w1, wm0, wm1, s], axis=0).astype(jnp.bfloat16)
    assert wpack.shape == (WPACK_ROWS, FEAT)

    return (w0.astype(jnp.bfloat16), wpack, biases)


def diffusion_cond(x, prepped):
    w0b, wpack, biases = prepped
    xb = x.reshape(B * N, C_IN)                         # flatten in the wrapper
    args = (xb, w0b, wpack, biases)

    flops = (2 * (B * N) * (C_IN * HID0 + HID0 * FEAT)  # backbone point MLP
             + 2 * 8 * (B * N) * FEAT                   # segmented-mean matmul
             + 2 * 2 * 8 * FEAT * FEAT)                 # mu MLP (padded rows)
    bytes_accessed = (sum(int(a.size) * a.dtype.itemsize for a in args)
                      + B * FEAT * 4)

    # Everything fits VMEM (<0.5 MiB total) -> gridless single invocation on one
    # TensorCore, whole-array VMEM blocks, no software-pipeline prologue/epilogue.
    vmem = pl.BlockSpec(memory_space=pltpu.MemorySpace.VMEM)
    return pl.pallas_call(
        diffusion_cond_kernel,
        out_shape=jax.ShapeDtypeStruct((B, FEAT), jnp.float32),
        in_specs=[vmem] * len(args),
        out_specs=vmem,
        cost_estimate=pl.CostEstimate(flops=flops,
                                      bytes_accessed=bytes_accessed,
                                      transcendentals=0),
    )(*args)


def init_params(key):
    ks = jax.random.split(key, 5)

    def linear(k, fan_in, fan_out):
        # PyTorch nn.Linear default init: U(-1/sqrt(fan_in), 1/sqrt(fan_in))
        bound = 1.0 / (fan_in ** 0.5)
        kw, kb = jax.random.split(k)
        w = jax.random.uniform(kw, (fan_in, fan_out), jnp.float32, -bound, bound)
        b = jax.random.uniform(kb, (1, fan_out), jnp.float32, -bound, bound)
        return w, b

    w0, b0 = linear(ks[0], C_IN, HID0)       # stand-in backbone layer 0
    w1, b1 = linear(ks[1], HID0, FEAT)       # stand-in backbone layer 1
    wm0, bm0 = linear(ks[2], FEAT, FEAT)     # mu[0]
    wm1, bm1 = linear(ks[3], FEAT, FEAT)     # mu[2]
    temp = jax.random.normal(ks[4], (1, FEAT), jnp.float32)  # nn.Embedding(1, 256) ~ N(0,1)
    return (w0, b0, w1, b1, wm0, bm0, wm1, bm1, temp)


def reference(x, params):
    # Matched-precision reference: same bf16 matmul operands as the kernel
    # (the point-mean itself is done exactly in f32 here).
    w0, b0, w1, b1, wm0, bm0, wm1, bm1, temp = params
    bf = jnp.bfloat16
    xb = x.reshape(B * N, C_IN)
    h = jnp.maximum(
        jnp.dot(xb.astype(bf), w0.astype(bf),
                preferred_element_type=jnp.float32) + b0, 0.0)
    f = jnp.maximum(
        jnp.dot(h.astype(bf), w1.astype(bf),
                preferred_element_type=jnp.float32) + b1, 0.0)
    g = f.reshape(B, N, FEAT).mean(axis=1)
    h1 = jnp.dot(g.astype(bf), wm0.astype(bf),
                 preferred_element_type=jnp.float32) + bm0
    h1 = jnp.where(h1 >= 0.0, h1, LEAKY_SLOPE * h1)
    return jnp.dot(h1.astype(bf), wm1.astype(bf),
                   preferred_element_type=jnp.float32) + bm1 + temp


if __name__ == "__main__":
    key = jax.random.PRNGKey(0)
    kx, kp = jax.random.split(key)
    x = jax.random.normal(kx, (B, N, C_IN), jnp.float32)
    params = init_params(kp)
    prepped = prepare_params(params)

    z = diffusion_cond(x, prepped)
    z = jax.block_until_ready(z)

    z_ref = reference(x, params)
    assert z.shape == (B, FEAT)
    # Tolerance covers the bf16 rounding of the point features fed into the
    # segmented-mean matmul and the folded constants (temp into bm1).
    assert jnp.allclose(z, z_ref, atol=5e-3, rtol=5e-3), "mismatch vs JAX reference"
    print("KERNEL_OK")
</pallas_src>

<mosaic_0001>
module attributes {stable_mosaic.version = 11 : i64} {
  func.func @diffusion_cond_kernel(%arg0: memref<256x19xf32, #tpu.memory_space<vmem>>, %arg1: memref<19x128xbf16, #tpu.memory_space<vmem>>, %arg2: memref<648x256xbf16, #tpu.memory_space<vmem>>, %arg3: memref<4x256xf32, #tpu.memory_space<vmem>>, %arg4: memref<2x256xf32, #tpu.memory_space<vmem>>) attributes {dimension_semantics = [], scalar_prefetch = 0 : i64, scratch_operands = 0 : i64, tpu.core_type = #tpu.core_type<tc>} {
    %c0 = arith.constant 0 : index
    %c0_0 = arith.constant 0 : index
    %0 = vector.load %arg3[%c0, %c0_0] : memref<4x256xf32, #tpu.memory_space<vmem>>, vector<4x256xf32>
    %1 = vector.extract_strided_slice %0 {offsets = [0, 0], sizes = [1, 128], strides = [1, 1]} : vector<4x256xf32> to vector<1x128xf32>
    %2 = vector.extract_strided_slice %0 {offsets = [1, 0], sizes = [1, 256], strides = [1, 1]} : vector<4x256xf32> to vector<1x256xf32>
    %3 = vector.extract_strided_slice %0 {offsets = [2, 0], sizes = [1, 256], strides = [1, 1]} : vector<4x256xf32> to vector<1x256xf32>
    %4 = vector.extract_strided_slice %0 {offsets = [3, 0], sizes = [1, 256], strides = [1, 1]} : vector<4x256xf32> to vector<1x256xf32>
    %c0_1 = arith.constant 0 : index
    %c0_2 = arith.constant 0 : index
    %5 = vector.load %arg1[%c0_1, %c0_2] : memref<19x128xbf16, #tpu.memory_space<vmem>>, vector<19x128xbf16>
    %c0_3 = arith.constant 0 : index
    %c0_4 = arith.constant 0 : index
    %6 = vector.load %arg2[%c0_3, %c0_4] : memref<648x256xbf16, #tpu.memory_space<vmem>>, vector<128x256xbf16>
    %cst = arith.constant 0.000000e+00 : f32
    %7 = vector.broadcast %cst : f32 to vector<8x256xf32>
    %c0_5 = arith.constant 0 : index
    %c0_6 = arith.constant 0 : index
    %8 = vector.load %arg0[%c0_5, %c0_6] : memref<256x19xf32, #tpu.memory_space<vmem>>, vector<128x19xf32>
    %9 = arith.truncf %8 : vector<128x19xf32> to vector<128x19xbf16>
    %cst_7 = arith.constant dense<0.000000e+00> : vector<128x128xf32>
    %10 = tpu.matmul %9, %5, %cst_7 {dimension_numbers = #tpu.dot_dimension_numbers<[1], [0], [0], [1], [0, 0, 1, 1], [], []>} : vector<128x19xbf16>, vector<19x128xbf16>, vector<128x128xf32> -> vector<128x128xf32>
    %11 = vector.broadcast %1 : vector<1x128xf32> to vector<128x128xf32>
    %12 = arith.addf %10, %11 : vector<128x128xf32>
    %cst_8 = arith.constant 0.000000e+00 : f32
    %13 = vector.broadcast %cst_8 : f32 to vector<128x128xf32>
    %14 = arith.maximumf %12, %13 : vector<128x128xf32>
    %15 = arith.truncf %14 : vector<128x128xf32> to vector<128x128xbf16>
    %cst_9 = arith.constant dense<0.000000e+00> : vector<128x256xf32>
    %16 = tpu.matmul %15, %6, %cst_9 {dimension_numbers = #tpu.dot_dimension_numbers<[1], [0], [0], [1], [0, 0, 1, 1], [], []>} : vector<128x128xbf16>, vector<128x256xbf16>, vector<128x256xf32> -> vector<128x256xf32>
    %17 = vector.broadcast %2 : vector<1x256xf32> to vector<128x256xf32>
    %18 = arith.addf %16, %17 : vector<128x256xf32>
    %cst_10 = arith.constant 0.000000e+00 : f32
    %19 = vector.broadcast %cst_10 : f32 to vector<128x256xf32>
    %20 = arith.maximumf %18, %19 : vector<128x256xf32>
    %c640 = arith.constant 640 : index
    %c0_11 = arith.constant 0 : index
    %21 = vector.load %arg2[%c640, %c0_11] : memref<648x256xbf16, #tpu.memory_space<vmem>>, vector<8x128xbf16>
    %22 = arith.truncf %20 : vector<128x256xf32> to vector<128x256xbf16>
    %cst_12 = arith.constant dense<0.000000e+00> : vector<8x256xf32>
    %23 = tpu.matmul %21, %22, %cst_12 {dimension_numbers = #tpu.dot_dimension_numbers<[1], [0], [0], [1], [0, 0, 1, 1], [], []>} : vector<8x128xbf16>, vector<128x256xbf16>, vector<8x256xf32> -> vector<8x256xf32>
    %24 = arith.addf %7, %23 : vector<8x256xf32>
    %c128 = arith.constant 128 : index
    %c0_13 = arith.constant 0 : index
    %25 = vector.load %arg0[%c128, %c0_13] : memref<256x19xf32, #tpu.memory_space<vmem>>, vector<128x19xf32>
    %26 = arith.truncf %25 : vector<128x19xf32> to vector<128x19xbf16>
    %cst_14 = arith.constant dense<0.000000e+00> : vector<128x128xf32>
    %27 = tpu.matmul %26, %5, %cst_14 {dimension_numbers = #tpu.dot_dimension_numbers<[1], [0], [0], [1], [0, 0, 1, 1], [], []>} : vector<128x19xbf16>, vector<19x128xbf16>, vector<128x128xf32> -> vector<128x128xf32>
    %28 = vector.broadcast %1 : vector<1x128xf32> to vector<128x128xf32>
    %29 = arith.addf %27, %28 : vector<128x128xf32>
    %cst_15 = arith.constant 0.000000e+00 : f32
    %30 = vector.broadcast %cst_15 : f32 to vector<128x128xf32>
    %31 = arith.maximumf %29, %30 : vector<128x128xf32>
    %32 = arith.truncf %31 : vector<128x128xf32> to vector<128x128xbf16>
    %cst_16 = arith.constant dense<0.000000e+00> : vector<128x256xf32>
    %33 = tpu.matmul %32, %6, %cst_16 {dimension_numbers = #tpu.dot_dimension_numbers<[1], [0], [0], [1], [0, 0, 1, 1], [], []>} : vector<128x128xbf16>, vector<128x256xbf16>, vector<128x256xf32> -> vector<128x256xf32>
    %34 = vector.broadcast %2 : vector<1x256xf32> to vector<128x256xf32>
    %35 = arith.addf %33, %34 : vector<128x256xf32>
    %cst_17 = arith.constant 0.000000e+00 : f32
    %36 = vector.broadcast %cst_17 : f32 to vector<128x256xf32>
    %37 = arith.maximumf %35, %36 : vector<128x256xf32>
    %c640_18 = arith.constant 640 : index
    %c128_19 = arith.constant 128 : index
    %38 = vector.load %arg2[%c640_18, %c128_19] : memref<648x256xbf16, #tpu.memory_space<vmem>>, vector<8x128xbf16>
    %39 = arith.truncf %37 : vector<128x256xf32> to vector<128x256xbf16>
    %cst_20 = arith.constant dense<0.000000e+00> : vector<8x256xf32>
    %40 = tpu.matmul %38, %39, %cst_20 {dimension_numbers = #tpu.dot_dimension_numbers<[1], [0], [0], [1], [0, 0, 1, 1], [], []>} : vector<8x128xbf16>, vector<128x256xbf16>, vector<8x256xf32> -> vector<8x256xf32>
    %41 = arith.addf %24, %40 : vector<8x256xf32>
    %c128_21 = arith.constant 128 : index
    %c0_22 = arith.constant 0 : index
    %42 = vector.load %arg2[%c128_21, %c0_22] : memref<648x256xbf16, #tpu.memory_space<vmem>>, vector<256x256xbf16>
    %43 = arith.truncf %41 : vector<8x256xf32> to vector<8x256xbf16>
    %cst_23 = arith.constant dense<0.000000e+00> : vector<8x256xf32>
    %44 = tpu.matmul %43, %42, %cst_23 {dimension_numbers = #tpu.dot_dimension_numbers<[1], [0], [0], [1], [0, 0, 1, 1], [], []>} : vector<8x256xbf16>, vector<256x256xbf16>, vector<8x256xf32> -> vector<8x256xf32>
    %45 = vector.broadcast %3 : vector<1x256xf32> to vector<8x256xf32>
    %46 = arith.addf %44, %45 : vector<8x256xf32>
    %cst_24 = arith.constant 0.000000e+00 : f32
    %47 = vector.broadcast %cst_24 : f32 to vector<8x256xf32>
    %48 = arith.cmpf oge, %46, %47 : vector<8x256xf32>
    %cst_25 = arith.constant 0.00999999977 : f32
    %49 = vector.broadcast %cst_25 : f32 to vector<8x256xf32>
    %50 = arith.mulf %49, %46 : vector<8x256xf32>
    %51 = arith.select %48, %46, %50 : vector<8x256xi1>, vector<8x256xf32>
    %c384 = arith.constant 384 : index
    %c0_26 = arith.constant 0 : index
    %52 = vector.load %arg2[%c384, %c0_26] : memref<648x256xbf16, #tpu.memory_space<vmem>>, vector<256x256xbf16>
    %53 = arith.truncf %51 : vector<8x256xf32> to vector<8x256xbf16>
    %cst_27 = arith.constant dense<0.000000e+00> : vector<8x256xf32>
    %54 = tpu.matmul %53, %52, %cst_27 {dimension_numbers = #tpu.dot_dimension_numbers<[1], [0], [0], [1], [0, 0, 1, 1], [], []>} : vector<8x256xbf16>, vector<256x256xbf16>, vector<8x256xf32> -> vector<8x256xf32>
    %55 = vector.broadcast %4 : vector<1x256xf32> to vector<8x256xf32>
    %56 = arith.addf %54, %55 : vector<8x256xf32>
    %57 = vector.extract_strided_slice %56 {offsets = [0, 0], sizes = [2, 256], strides = [1, 1]} : vector<8x256xf32> to vector<2x256xf32>
    %c0_28 = arith.constant 0 : index
    %c0_29 = arith.constant 0 : index
    %58 = vector.load %arg4[%c0_28, %c0_29] : memref<2x256xf32, #tpu.memory_space<vmem>>, vector<2x256xf32>
    tpu.vector_store %arg4[%c0_28, %c0_29], %57 {strides = array<i32>} : memref<2x256xf32, #tpu.memory_space<vmem>>, vector<2x256xf32>,
    return
  }
}

</mosaic_0001>

<bundles_post_ra>
// kernel: tpu_custom_call.1
= control target key start
LH: loop header
LB: loop body
LE: loop exit
PB: predicated region body
PF: predicated region fallthrough
CT: control target
= control target key end

     0   :  { %9 = vsyncpa [#allocation3], 0  ;;  %s2265_s0 = inlined_call_operand.vmem [shape: f32[256,19], index: 0, kind: input, shape index: {}]   ;;  %s2266_s1 = inlined_call_operand.vmem [shape: bf16[19,128], index: 1, kind: input, shape index: {}]   ;;  %s2267_s2 = inlined_call_operand.hbm [shape: bf16[648,256], index: 2, kind: input, shape index: {}]   ;;  %s2268_s3 = inlined_call_operand.vmem [shape: f32[4,256], index: 3, kind: input, shape index: {}]   ;;  %s2269_s4 = inlined_call_operand.hbm [shape: f32[2,256], index: 4, kind: output, shape index: {}]  }
   0x1   :  { %10 = vsyncpa [#allocation4], 0  ;;  %s1812_s15 = smov [#allocation2]   ;;  %s1764_s19 = scalar_lea.hbm %s2267_s2, 10368 }
   0x2   :  { %s20_s16 = sshll.u32 %s1812_s15, 4  ;;  %p1765_p0 = scmp.ne.s32.totalorder %s2267_s2, %s1764_s19  ;;  %s21_s16 = int_to_ptr.vmem [resolvable:$true] %s20_s16 }
   0x3   :  { %p1768_p1 = scmp.lt.u32.totalorder %s1764_s19, %s2267_s2 }
   0x5   :  { %p1770_p2 = pnand %p1768_p1, %p1765_p0 }
   0x7   :  { %1773 = shalt.err (!%p1770_p2)
}
   0x8   :  { %s1774_s24 = scalar_lea.vmem %s21_s16, 10368  ;;  %p1779_p4 = scmp.lt.s32.totalorder %s21_s16, %s21_s16 }
   0x9   :  { %p1775_p3 = scmp.ne.s32.totalorder %s21_s16, %s1774_s24  ;;  %p1780_p5 = scmp.lt.s32.totalorder %s1774_s24, %s1774_s24 }
   0xb   :  { %p1781_p6 = por %p1780_p5, %p1779_p4 }
   0xd   :  { %p1782_p7 = pnand %p1781_p6, %p1775_p3 }
   0xf   :  { %1785 = shalt.err (!%p1782_p7)
}
  0x10   :  { %s1813_s25 = smov 128   ;;  %s1814_s26 = smov 8  }
  0x11   :  { %26 = dma.hbm_to_vmem [thread:$0]  %s2267_s2, 10368, %s21_s16, [#allocation3], %s1813_s25, %s1813_s25, %s1814_s26  }
  0x12   :  { %1808 = dma.done.wait [#allocation3], 10368  }
  0x13   :  { %1809 = vsyncadd [#allocation3], 4294956928  ;;  %vm115_vm0 = vcmask 1040384   ;;  %vm116_vm1 = vcmask 1041408   ;;  %v1815_v0 = vmov 65535   ;;  %v1858_v2 = vld [vmem:[%s2266_s1] sm:$0xff]   ;;  %v77_v47 = vlaneseq }
  0x14   :  { %v117_v1 = vsel %vm115_vm0, 4294967295, %v1815_v0  ;;  %v1642_v4 = vld [vmem:[%s2266_s1 + $0x8] ss:$0 sps:$4 sm:$0x33]   ;;  %v53_v5 = vld [vmem:[%s2265_s0] sm:$0xff]  ;;  %1575 = vmatprep.subr.bf16.mxu0 %v1858_v2  ;;  %vm90_vm2 = vcmask 154624  }
  0x15   :  { %v118_v3 = vsel %vm116_vm1, %v117_v1, 0  ;;  %v54_v6 = vld [vmem:[%s2265_s0 + $0x8] sm:$0xff]  ;;  %1576 = vmatpush3.bf16.msra.mxu0 %v1858_v2  ;;  %v55_v9 = vld [vmem:[%s2265_s0 + $0x10] sm:$0xff]  ;;  %v56_v10 = vld [vmem:[%s2265_s0 + $0x18] sm:$0xff]  ;;  %v1816_v46 = vmov 0   ;;  %v1992_v48 = vshrl.u32 %v77_v47, 7 }
  0x16   :  { %v1871_v7 = vand.u32 %v1642_v4, %v118_v3  ;;  %v69_v8 = vpack.c.bf16 %v54_v6, %v53_v5  ;;  %v57_v11 = vld [vmem:[%s2265_s0 + $0x20] sm:$0xff]  ;;  %v58_v12 = vld [vmem:[%s2265_s0 + $0x28] sm:$0xff]  ;;  %v70_v13 = vpack.c.bf16 %v56_v10, %v55_v9  ;;  %v1893_v17 = vld [vmem:[#allocation2 + $0x14] ss:$8 sps:$4 sm:$0xff]   ;;  %414 = vmatprep.mubr.bf16.mxu1 %v1816_v46 }
  0x17   :  { %v1887_v14 = vld [vmem:[#allocation2 + $0x4] ss:$8 sps:$4 sm:$0xff]   ;;  %v71_v15 = vpack.c.bf16 %v58_v12, %v57_v11  ;;  %v1890_v16 = vld [vmem:[#allocation2] ss:$8 sps:$4 sm:$0xff]   ;;  %v59_v18 = vld [vmem:[%s2265_s0 + $0x30] sm:$0xff]  ;;  %v79_v49 = vsub.s32 0, %v1992_v48 }
  0x18   :  { %1577 = vmatprep.subr.bf16.mxu0 %v1871_v7  ;;  %1579 = vmatprep.mubr.msk.bf16.mxu0 %vm90_vm2, %v69_v8  ;;  %v60_v19 = vld [vmem:[%s2265_s0 + $0x38] sm:$0xff]  ;;  %v61_v20 = vld [vmem:[%s2265_s0 + $0x40] sm:$0xff]  ;;  %v62_v21 = vld [vmem:[%s2265_s0 + $0x48] sm:$0xff] }
  0x19   :  { %1578 = vmatpush3.bf16.msra.mxu0 %v1871_v7  ;;  %1615 = vmatprep.subr.bf16.mxu1 %v1887_v14  ;;  %v1913_v22 = vld [vmem:[#allocation2 + $0x10] ss:$8 sps:$4 sm:$0xff]   ;;  %v1916_v23 = vld [vmem:[#allocation2 + $0x24] ss:$8 sps:$4 sm:$0xff]   ;;  %v72_v24 = vpack.c.bf16 %v60_v19, %v59_v18  ;;  %v1919_v25 = vld [vmem:[#allocation2 + $0x20] ss:$8 sps:$4 sm:$0xff]   ;;  %v73_v26 = vpack.c.bf16 %v62_v21, %v61_v20 }
  0x1a   :  { %342 = vmatprep.subr.bf16.mxu0 %v1887_v14  ;;  %1623 = vmatpush1.bf16.msra.mxu1 %v1890_v16  ;;  %v1923_v27 = vld [vmem:[#allocation2 + $0x34] ss:$8 sps:$4 sm:$0xff]   ;;  %v1932_v30 = vld [vmem:[#allocation2 + $0x30] ss:$8 sps:$4 sm:$0xff]   ;;  %v65_v31 = vld [vmem:[%s2265_s0 + $0x60] sm:$0xff] }
  0x1b   :  { %1616 = vmatprep.subr.bf16.mxu1 %v1893_v17  ;;  %v63_v28 = vld [vmem:[%s2265_s0 + $0x50] sm:$0xff]  ;;  %v64_v29 = vld [vmem:[%s2265_s0 + $0x58] sm:$0xff]  ;;  %v66_v32 = vld [vmem:[%s2265_s0 + $0x68] sm:$0xff] }
  0x1c   :  { %1580 = vmatmul.mubr.msk.bf16.vlgmr.msra.gmra.mrb[0].mxu0 %vm90_vm2, %v70_v13  ;;  %v1942_v33 = vld [vmem:[#allocation2 + $0x44] ss:$8 sps:$4 sm:$0xff]   ;;  %v1948_v34 = vld [vmem:[#allocation2 + $0x40] ss:$8 sps:$4 sm:$0xff]   ;;  %v74_v35 = vpack.c.bf16 %v64_v29, %v63_v28  ;;  %v1951_v36 = vld [vmem:[#allocation2 + $0x54] ss:$8 sps:$4 sm:$0xff]   ;;  %v75_v37 = vpack.c.bf16 %v66_v32, %v65_v31 }
  0x1d   :  { %1583 = vmatprep.mubr.msk.bf16.mxu0 %vm90_vm2, %v71_v15  ;;  %343 = vmatpush1.bf16.msra.mxu0 %v1890_v16  ;;  %v67_v38 = vld [vmem:[%s2265_s0 + $0x70] sm:$0xff]  ;;  %v68_v39 = vld [vmem:[%s2265_s0 + $0x78] sm:$0xff]  ;;  %v1973_v42 = vld [vmem:[#allocation2 + $0x64] ss:$8 sps:$4 sm:$0xff]  }
  0x1e   :  { %344 = vmatprep.subr.bf16.mxu0 %v1893_v17  ;;  %1624 = vmatpush1.bf16.msra.mxu1 %v1913_v22  ;;  %v1962_v40 = vld [vmem:[#allocation2 + $0x50] ss:$8 sps:$4 sm:$0xff]   ;;  %v76_v41 = vpack.c.bf16 %v68_v39, %v67_v38  ;;  %v1975_v43 = vld [vmem:[#allocation2 + $0x60] ss:$8 sps:$4 sm:$0xff]   ;;  %v1981_v44 = vld [vmem:[#allocation2 + $0x74] ss:$8 sps:$4 sm:$0xff]  }
  0x1f   :  { %1617 = vmatprep.subr.bf16.mxu1 %v1916_v23  ;;  %v1983_v45 = vld [vmem:[#allocation2 + $0x70] ss:$8 sps:$4 sm:$0xff]   ;;  %v1998_v50 = vld [vmem:[%s2268_s3] sm:$0xff] }
  0x20   :  { %v2001_v51 = vrot.slane %v1998_v50, %v79_v49 }
  0x21   :  { %345 = vmatpush1.bf16.msra.mxu0 %v1913_v22 }
  0x22   :  { %346 = vmatprep.subr.bf16.mxu0 %v1916_v23  ;;  %1625 = vmatpush1.bf16.msra.mxu1 %v1919_v25 }
  0x23   :  { %1618 = vmatprep.subr.bf16.mxu1 %v1923_v27 }
  0x24   :  { %1584 = vmatmul.mubr.msk.bf16.gmra.mrb[4].mxu0 %vm90_vm2, %v72_v24 }
  0x25   :  { %1587 = vmatprep.mubr.msk.bf16.mxu0 %vm90_vm2, %v73_v26  ;;  %347 = vmatpush1.bf16.msra.mxu0 %v1919_v25 }
  0x26   :  { %348 = vmatprep.subr.bf16.mxu0 %v1923_v27  ;;  %1626 = vmatpush1.bf16.msra.mxu1 %v1932_v30 }
  0x27   :  { %1619 = vmatprep.subr.bf16.mxu1 %v1942_v33 }
  0x29   :  { %349 = vmatpush1.bf16.msra.mxu0 %v1932_v30 }
  0x2a   :  { %350 = vmatprep.subr.bf16.mxu0 %v1942_v33  ;;  %1627 = vmatpush1.bf16.msra.mxu1 %v1948_v34 }
  0x2b   :  { %1620 = vmatprep.subr.bf16.mxu1 %v1951_v36 }
  0x2c   :  { %1588 = vmatmul.mubr.msk.bf16.gmra.mrb[8].mxu0 %vm90_vm2, %v74_v35 }
  0x2d   :  { %1591 = vmatprep.mubr.msk.bf16.mxu0 %vm90_vm2, %v75_v37  ;;  %351 = vmatpush1.bf16.msra.mxu0 %v1948_v34 }
  0x2e   :  { %352 = vmatprep.subr.bf16.mxu0 %v1951_v36  ;;  %1628 = vmatpush1.bf16.msra.mxu1 %v1962_v40 }
  0x2f   :  { %1621 = vmatprep.subr.bf16.mxu1 %v1973_v42 }
  0x31   :  { %353 = vmatpush1.bf16.msra.mxu0 %v1962_v40 }
  0x32   :  { %354 = vmatprep.subr.bf16.mxu0 %v1973_v42  ;;  %1629 = vmatpush1.bf16.msra.mxu1 %v1975_v43 }
  0x33   :  { %1622 = vmatprep.subr.bf16.mxu1 %v1981_v44 }
  0x34   :  { %1592 = vmatmul.mubr.msk.bf16.gmra.mrb[12].mxu0 %vm90_vm2, %v76_v41 }
  0x35   :  { %355 = vmatpush1.bf16.msra.mxu0 %v1975_v43  ;;  %374 = vmatprep.mubr.bf16.mxu0 %v1816_v46 }
  0x36   :  { %356 = vmatprep.subr.bf16.mxu0 %v1981_v44  ;;  %1630 = vmatpush1.bf16.msra.mxu1 %v1983_v45 }
  0x39   :  { %357 = vmatpush1.bf16.msra.mxu0 %v1983_v45 }
  0x3a   :  { %1595 = vmatprep.subr.bf16.mxu0 %v1858_v2 }
  0xef   :  { %v1581_v52 = vpop.f32.mrb[0].mxu0 }
  0xf0   :  { %v165_v53 = vadd.f32 %v1581_v52, %v2001_v51  ;;  %v156_v54 = vpop.f32.mrb[1].mxu0 }
  0xf1   :  { %v157_v55 = vadd.f32 %v156_v54, %v2001_v51  ;;  %v1582_v56 = vpop.f32.mrb[2].mxu0 }
  0xf2   :  { %v168_v57 = vadd.f32 %v1582_v56, %v2001_v51  ;;  %v159_v58 = vpop.f32.mrb[3].mxu0  ;;  %v221_v60 = vmax.f32 %v165_v53, 0.0 }
  0xf3   :  { %v160_v59 = vadd.f32 %v159_v58, %v2001_v51  ;;  %v219_v62 = vmax.f32 %v157_v55, 0.0  ;;  %v505_v58 = vld [vmem:[%s2265_s0 + $0x88] sm:$0xff] }
  0xf4   :  { %v222_v61 = vmax.f32 %v168_v57, 0.0  ;;  %v504_v57 = vld [vmem:[%s2265_s0 + $0x80] sm:$0xff] }
  0xf5   :  { %v220_v63 = vmax.f32 %v160_v59, 0.0 }
  0xf6   :  { %v236_v0 = vpack.c.bf16 %v222_v61, %v221_v60 }
  0xf7   :  { %v235_v1 = vpack.c.bf16 %v220_v63, %v219_v62  ;;  %v1585_v3 = vpop.f32.mrb[4].mxu0  ;;  %v520_v63 = vpack.c.bf16 %v505_v58, %v504_v57 }
  0xf8   :  { %v181_v4 = vadd.f32 %v1585_v3, %v2001_v51  ;;  %v172_v5 = vpop.f32.mrb[5].mxu0  ;;  %v506_v3 = vld [vmem:[%s2265_s0 + $0x90] sm:$0xff] }
  0xf9   :  { %375 = vmatmul.mubr.bf16.vlgmr.msra.gmra.mrb[16].mxu0 %v235_v1  ;;  %v173_v6 = vadd.f32 %v172_v5, %v2001_v51  ;;  %v1586_v8 = vpop.f32.mrb[6].mxu0  ;;  %v508_v5 = vld [vmem:[%s2265_s0 + $0xa0] sm:$0xff] }
  0xfa   :  { %1596 = vmatpush3.bf16.msra.mxu0 %v1858_v2  ;;  %v225_v9 = vmax.f32 %v181_v4, 0.0  ;;  %v184_v10 = vadd.f32 %v1586_v8, %v2001_v51  ;;  %v175_v11 = vpop.f32.mrb[7].mxu0  ;;  %384 = vmatprep.mubr.bf16.mxu0 %v1816_v46  ;;  %v507_v4 = vld [vmem:[%s2265_s0 + $0x98] sm:$0xff] }
  0xfb   :  { %v223_v12 = vmax.f32 %v173_v6, 0.0  ;;  %v176_v13 = vadd.f32 %v175_v11, %v2001_v51  ;;  %1597 = vmatprep.subr.bf16.mxu0 %v1871_v7  ;;  %v509_v6 = vld [vmem:[%s2265_s0 + $0xa8] sm:$0xff]  ;;  %v521_v8 = vpack.c.bf16 %v507_v4, %v506_v3  ;;  %v511_v11 = vld [vmem:[%s2265_s0 + $0xb8] sm:$0xff] }
  0xfc   :  { %v226_v15 = vmax.f32 %v184_v10, 0.0  ;;  %v510_v10 = vld [vmem:[%s2265_s0 + $0xb0] sm:$0xff] }
  0xfd   :  { %v224_v18 = vmax.f32 %v176_v13, 0.0  ;;  %v513_v13 = vld [vmem:[%s2265_s0 + $0xc8] sm:$0xff] }
  0xfe   :  { %v238_v19 = vpack.c.bf16 %v226_v15, %v225_v9  ;;  %1598 = vmatpush3.bf16.msra.mxu0 %v1871_v7  ;;  %v522_v9 = vpack.c.bf16 %v509_v6, %v508_v5  ;;  %v523_v15 = vpack.c.bf16 %v511_v11, %v510_v10 }
  0xff   :  { %v237_v20 = vpack.c.bf16 %v224_v18, %v223_v12  ;;  %v1589_v21 = vpop.f32.mrb[8].mxu0  ;;  %673 = vmatprep.subr.bf16.mxu0 %v1887_v14  ;;  %v512_v12 = vld [vmem:[%s2265_s0 + $0xc0] sm:$0xff] }
 0x100   :  { %v197_v2 = vadd.f32 %v1589_v21, %v2001_v51  ;;  %v188_v24 = vpop.f32.mrb[9].mxu0  ;;  %v524_v18 = vpack.c.bf16 %v513_v13, %v512_v12  ;;  %v518_v21 = vld [vmem:[%s2265_s0 + $0xf0] sm:$0xff] }
 0x101   :  { %385 = vmatmul.mubr.bf16.gmra.mrb[20].mxu0 %v236_v0  ;;  %v189_v26 = vadd.f32 %v188_v24, %v2001_v51  ;;  %v1590_v28 = vpop.f32.mrb[10].mxu0 }
 0x102   :  { %394 = vmatprep.mubr.bf16.mxu0 %v1816_v46  ;;  %v229_v29 = vmax.f32 %v197_v2, 0.0  ;;  %v200_v31 = vadd.f32 %v1590_v28, %v2001_v51  ;;  %v191_v32 = vpop.f32.mrb[11].mxu0 }
 0x103   :  { %v227_v35 = vmax.f32 %v189_v26, 0.0  ;;  %v192_v7 = vadd.f32 %v191_v32, %v2001_v51 }
 0x104   :  { %v230_v37 = vmax.f32 %v200_v31, 0.0 }
 0x105   :  { %v228_v38 = vmax.f32 %v192_v7, 0.0 }
 0x106   :  { %v240_v39 = vpack.c.bf16 %v230_v37, %v229_v29 }
 0x107   :  { %v239_v14 = vpack.c.bf16 %v228_v38, %v227_v35  ;;  %v1593_v41 = vpop.f32.mrb[12].mxu0 }
 0x108   :  { %v213_v47 = vadd.f32 %v1593_v41, %v2001_v51  ;;  %v204_v49 = vpop.f32.mrb[13].mxu0 }
 0x109   :  { %395 = vmatmul.mubr.bf16.gmra.mrb[24].mxu0 %v237_v20  ;;  %415 = vmatmul.mubr.bf16.vlgmr.msra.gmra.mrb[0].mxu1 %v239_v14  ;;  %v205_v52 = vadd.f32 %v204_v49, %v2001_v51  ;;  %v1594_v53 = vpop.f32.mrb[14].mxu0 }
 0x10a   :  { %404 = vmatprep.mubr.bf16.mxu0 %v1816_v46  ;;  %v233_v54 = vmax.f32 %v213_v47, 0.0  ;;  %424 = vmatprep.mubr.bf16.mxu1 %v1816_v46  ;;  %v216_v55 = vadd.f32 %v1594_v53, %v2001_v51  ;;  %v207_v56 = vpop.f32.mrb[15].mxu0 }
 0x10b   :  { %v231_v59 = vmax.f32 %v205_v52, 0.0  ;;  %v208_v60 = vadd.f32 %v207_v56, %v2001_v51 }
 0x10c   :  { %v234_v61 = vmax.f32 %v216_v55, 0.0 }
 0x10d   :  { %v232_v62 = vmax.f32 %v208_v60, 0.0 }
 0x10e   :  { %v242_v0 = vpack.c.bf16 %v234_v61, %v233_v54 }
 0x10f   :  { %v241_v1 = vpack.c.bf16 %v232_v62, %v231_v59 }
 0x111   :  { %405 = vmatmul.mubr.bf16.gmra.mrb[28].mxu0 %v238_v19  ;;  %425 = vmatmul.mubr.bf16.gmra.mrb[4].mxu1 %v240_v39  ;;  %v514_v19 = vld [vmem:[%s2265_s0 + $0xd0] sm:$0xff] }
 0x112   :  { %1599 = vmatprep.mubr.msk.bf16.mxu0 %vm90_vm2, %v520_v63  ;;  %434 = vmatprep.mubr.bf16.mxu1 %v1816_v46 }
 0x119   :  { %1600 = vmatmul.mubr.msk.bf16.vlgmr.msra.gmra.mrb[32].mxu0 %vm90_vm2, %v521_v8  ;;  %435 = vmatmul.mubr.bf16.gmra.mrb[8].mxu1 %v241_v1 }
 0x11a   :  { %1603 = vmatprep.mubr.msk.bf16.mxu0 %vm90_vm2, %v522_v9  ;;  %444 = vmatprep.mubr.bf16.mxu1 %v1816_v46 }
 0x11b   :  { %674 = vmatpush1.bf16.msra.mxu0 %v1890_v16  ;;  %v515_v16 = vld [vmem:[%s2265_s0 + $0xd8] sm:$0xff] }
 0x11c   :  { %675 = vmatprep.subr.bf16.mxu0 %v1893_v17  ;;  %v516_v17 = vld [vmem:[%s2265_s0 + $0xe0] sm:$0xff] }
 0x11f   :  { %676 = vmatpush1.bf16.msra.mxu0 %v1913_v22  ;;  %v517_v22 = vld [vmem:[%s2265_s0 + $0xe8] sm:$0xff] }
 0x120   :  { %677 = vmatprep.subr.bf16.mxu0 %v1916_v23  ;;  %v525_v23 = vpack.c.bf16 %v515_v16, %v514_v19  ;;  %v526_v20 = vpack.c.bf16 %v517_v22, %v516_v17 }
 0x121   :  { %1604 = vmatmul.mubr.msk.bf16.gmra.mrb[36].mxu0 %vm90_vm2, %v523_v15  ;;  %445 = vmatmul.mubr.bf16.gmra.mrb[12].mxu1 %v242_v0 }
 0x122   :  { %1607 = vmatprep.mubr.msk.bf16.mxu0 %vm90_vm2, %v524_v18  ;;  %867 = vmatprep.mubr.bf16.mxu1 %v1816_v46 }
 0x123   :  { %678 = vmatpush1.bf16.msra.mxu0 %v1919_v25  ;;  %v519_v25 = vld [vmem:[%s2265_s0 + $0xf8] sm:$0xff] }
 0x124   :  { %679 = vmatprep.subr.bf16.mxu0 %v1923_v27  ;;  %v527_v27 = vpack.c.bf16 %v519_v25, %v518_v21 }
 0x127   :  { %680 = vmatpush1.bf16.msra.mxu0 %v1932_v30  ;;  %v246_v30 = vsub.s32 1, %v1992_v48 }
 0x128   :  { %681 = vmatprep.subr.bf16.mxu0 %v1942_v33  ;;  %v250_v33 = vsub.s32 5, %v1992_v48 }
 0x129   :  { %1608 = vmatmul.mubr.msk.bf16.gmra.mrb[40].mxu0 %vm90_vm2, %v525_v23 }
 0x12a   :  { %1611 = vmatprep.mubr.msk.bf16.mxu0 %vm90_vm2, %v526_v20 }
 0x12b   :  { %682 = vmatpush1.bf16.msra.mxu0 %v1948_v34  ;;  %v247_v34 = vrot.slane %v1998_v50, %v246_v30 }
 0x12c   :  { %683 = vmatprep.subr.bf16.mxu0 %v1951_v36  ;;  %v251_v36 = vrot.slane %v1998_v50, %v250_v33 }
 0x12f   :  { %684 = vmatpush1.bf16.msra.mxu0 %v1962_v40  ;;  %v2106_v40 = vrot.slane %v247_v34, %v246_v30 }
 0x130   :  { %685 = vmatprep.subr.bf16.mxu0 %v1973_v42  ;;  %v2108_v42 = vrot.slane %v251_v36, %v246_v30 }
 0x131   :  { %1612 = vmatmul.mubr.msk.bf16.gmra.mrb[44].mxu0 %vm90_vm2, %v527_v27 }
 0x132   :  { %705 = vmatprep.mubr.bf16.mxu0 %v1816_v46 }
 0x133   :  { %686 = vmatpush1.bf16.msra.mxu0 %v1975_v43 }
 0x134   :  { %687 = vmatprep.subr.bf16.mxu0 %v1981_v44 }
 0x137   :  { %688 = vmatpush1.bf16.msra.mxu0 %v1983_v45 }
 0x1cc   :  { %v376_v2 = vpop.f32.mrb[16].mxu0 }
 0x1cd   :  { %v377_v24 = vadd.f32 %v376_v2, %v2106_v40  ;;  %v378_v43 = vpop.f32.mrb[17].mxu0 }
 0x1ce   :  { %v379_v44 = vadd.f32 %v378_v43, %v2108_v42  ;;  %v380_v26 = vpop.f32.mrb[18].mxu0 }
 0x1cf   :  { %v381_v45 = vadd.f32 %v380_v26, %v2106_v40  ;;  %v382_v28 = vpop.f32.mrb[19].mxu0  ;;  %v455_v31 = vmax.f32 %v377_v24, 0.0 }
 0x1d0   :  { %v383_v29 = vadd.f32 %v382_v28, %v2108_v42  ;;  %v456_v35 = vmax.f32 %v379_v44, 0.0 }
 0x1d1   :  { %v457_v32 = vmax.f32 %v381_v45, 0.0 }
 0x1d2   :  { %v458_v50 = vmax.f32 %v383_v29, 0.0 }
 0x1d3   :  { %v2114_v7 = vpack.c.bf16 %v457_v32, %v455_v31 }
 0x1d4   :  { %v2116_v37 = vpack.c.bf16 %v458_v50, %v456_v35  ;;  %v386_v38 = vpop.f32.mrb[20].mxu0 }
 0x1d5   :  { %v387_v39 = vadd.f32 %v386_v38, %v2106_v40  ;;  %v388_v14 = vpop.f32.mrb[21].mxu0 }
 0x1d6   :  { %v389_v41 = vadd.f32 %v388_v14, %v2108_v42  ;;  %v390_v47 = vpop.f32.mrb[22].mxu0 }
 0x1d7   :  { %v391_v49 = vadd.f32 %v390_v47, %v2106_v40  ;;  %v392_v52 = vpop.f32.mrb[23].mxu0  ;;  %v459_v54 = vmax.f32 %v387_v39, 0.0 }
 0x1d8   :  { %v393_v53 = vadd.f32 %v392_v52, %v2108_v42  ;;  %v460_v56 = vmax.f32 %v389_v41, 0.0 }
 0x1d9   :  { %v461_v55 = vmax.f32 %v391_v49, 0.0 }
 0x1da   :  { %v462_v57 = vmax.f32 %v393_v53, 0.0 }
 0x1db   :  { %v2122_v58 = vpack.c.bf16 %v461_v55, %v459_v54 }
 0x1dc   :  { %v2124_v59 = vpack.c.bf16 %v462_v57, %v460_v56  ;;  %v396_v60 = vpop.f32.mrb[24].mxu0  ;;  %v416_v61 = vpop.f32.mrb[0].mxu1 }
 0x1dd   :  { %v397_v62 = vadd.f32 %v396_v60, %v2106_v40  ;;  %v398_v63 = vpop.f32.mrb[25].mxu0  ;;  %v417_v0 = vadd.f32 %v416_v61, %v2106_v40  ;;  %v418_v1 = vpop.f32.mrb[1].mxu1 }
 0x1de   :  { %v399_v3 = vadd.f32 %v398_v63, %v2108_v42  ;;  %v400_v4 = vpop.f32.mrb[26].mxu0  ;;  %v419_v5 = vadd.f32 %v418_v1, %v2108_v42  ;;  %v420_v6 = vpop.f32.mrb[2].mxu1 }
 0x1df   :  { %v401_v8 = vadd.f32 %v400_v4, %v2106_v40  ;;  %v402_v9 = vpop.f32.mrb[27].mxu0  ;;  %v471_v10 = vmax.f32 %v417_v0, 0.0  ;;  %v421_v11 = vadd.f32 %v420_v6, %v2106_v40  ;;  %v422_v12 = vpop.f32.mrb[3].mxu1  ;;  %v463_v19 = vmax.f32 %v397_v62, 0.0 }
 0x1e0   :  { %v403_v13 = vadd.f32 %v402_v9, %v2108_v42  ;;  %v472_v15 = vmax.f32 %v419_v5, 0.0  ;;  %v423_v18 = vadd.f32 %v422_v12, %v2108_v42  ;;  %v464_v22 = vmax.f32 %v399_v3, 0.0 }
 0x1e1   :  { %v465_v16 = vmax.f32 %v401_v8, 0.0  ;;  %v473_v17 = vmax.f32 %v421_v11, 0.0 }
 0x1e2   :  { %v466_v23 = vmax.f32 %v403_v13, 0.0  ;;  %v474_v20 = vmax.f32 %v423_v18, 0.0 }
 0x1e3   :  { %v2134_v21 = vpack.c.bf16 %v465_v16, %v463_v19  ;;  %v2136_v25 = vpack.c.bf16 %v473_v17, %v471_v10 }
 0x1e4   :  { %v2138_v27 = vpack.c.bf16 %v466_v23, %v464_v22  ;;  %v406_v30 = vpop.f32.mrb[28].mxu0  ;;  %v2140_v33 = vpack.c.bf16 %v474_v20, %v472_v15  ;;  %v426_v34 = vpop.f32.mrb[4].mxu1 }
 0x1e5   :  { %v407_v36 = vadd.f32 %v406_v30, %v2106_v40  ;;  %v408_v2 = vpop.f32.mrb[29].mxu0  ;;  %v427_v24 = vadd.f32 %v426_v34, %v2106_v40  ;;  %v428_v43 = vpop.f32.mrb[5].mxu1 }
 0x1e6   :  { %v409_v44 = vadd.f32 %v408_v2, %v2108_v42  ;;  %v410_v26 = vpop.f32.mrb[30].mxu0  ;;  %v429_v45 = vadd.f32 %v428_v43, %v2108_v42  ;;  %v430_v28 = vpop.f32.mrb[6].mxu1 }
 0x1e7   :  { %v411_v29 = vadd.f32 %v410_v26, %v2106_v40  ;;  %v412_v31 = vpop.f32.mrb[31].mxu0  ;;  %v475_v32 = vmax.f32 %v427_v24, 0.0  ;;  %v431_v35 = vadd.f32 %v430_v28, %v2106_v40  ;;  %v432_v50 = vpop.f32.mrb[7].mxu1  ;;  %v467_v41 = vmax.f32 %v407_v36, 0.0 }
 0x1e8   :  { %v413_v38 = vadd.f32 %v412_v31, %v2108_v42  ;;  %v476_v39 = vmax.f32 %v429_v45, 0.0  ;;  %v433_v14 = vadd.f32 %v432_v50, %v2108_v42  ;;  %v468_v52 = vmax.f32 %v409_v44, 0.0 }
 0x1e9   :  { %v469_v47 = vmax.f32 %v411_v29, 0.0  ;;  %v477_v49 = vmax.f32 %v431_v35, 0.0 }
 0x1ea   :  { %v470_v53 = vmax.f32 %v413_v38, 0.0  ;;  %v478_v54 = vmax.f32 %v433_v14, 0.0 }
 0x1eb   :  { %v2150_v55 = vpack.c.bf16 %v469_v47, %v467_v41  ;;  %v2152_v56 = vpack.c.bf16 %v477_v49, %v475_v32 }
 0x1ec   :  { %v2154_v57 = vpack.c.bf16 %v470_v53, %v468_v52  ;;  %v1601_v60 = vpop.f32.mrb[32].mxu0  ;;  %v2156_v61 = vpack.c.bf16 %v478_v54, %v476_v39  ;;  %v436_v62 = vpop.f32.mrb[8].mxu1 }
 0x1ed   :  { %v595_v63 = vadd.f32 %v1601_v60, %v2001_v51  ;;  %v586_v0 = vpop.f32.mrb[33].mxu0  ;;  %v437_v1 = vadd.f32 %v436_v62, %v2106_v40  ;;  %v438_v3 = vpop.f32.mrb[9].mxu1 }
 0x1ee   :  { %v587_v4 = vadd.f32 %v586_v0, %v2001_v51  ;;  %v1602_v5 = vpop.f32.mrb[34].mxu0  ;;  %v439_v6 = vadd.f32 %v438_v3, %v2108_v42  ;;  %v440_v8 = vpop.f32.mrb[10].mxu1 }
 0x1ef   :  { %v598_v9 = vadd.f32 %v1602_v5, %v2001_v51  ;;  %v589_v10 = vpop.f32.mrb[35].mxu0  ;;  %v479_v11 = vmax.f32 %v437_v1, 0.0  ;;  %v441_v12 = vadd.f32 %v440_v8, %v2106_v40  ;;  %v442_v13 = vpop.f32.mrb[11].mxu1  ;;  %v651_v16 = vmax.f32 %v595_v63, 0.0 }
 0x1f0   :  { %v590_v15 = vadd.f32 %v589_v10, %v2001_v51  ;;  %v480_v18 = vmax.f32 %v439_v6, 0.0  ;;  %v443_v19 = vadd.f32 %v442_v13, %v2108_v42  ;;  %v649_v23 = vmax.f32 %v587_v4, 0.0 }
 0x1f1   :  { %v652_v17 = vmax.f32 %v598_v9, 0.0  ;;  %v481_v22 = vmax.f32 %v441_v12, 0.0 }
 0x1f2   :  { %v650_v20 = vmax.f32 %v590_v15, 0.0  ;;  %v482_v30 = vmax.f32 %v443_v19, 0.0 }
 0x1f3   :  { %v666_v34 = vpack.c.bf16 %v652_v17, %v651_v16  ;;  %v2166_v36 = vpack.c.bf16 %v481_v22, %v479_v11 }
 0x1f4   :  { %v665_v2 = vpack.c.bf16 %v650_v20, %v649_v23  ;;  %v1605_v24 = vpop.f32.mrb[36].mxu0  ;;  %v2168_v43 = vpack.c.bf16 %v482_v30, %v480_v18  ;;  %v446_v44 = vpop.f32.mrb[12].mxu1 }
 0x1f5   :  { %v611_v26 = vadd.f32 %v1605_v24, %v2001_v51  ;;  %v602_v45 = vpop.f32.mrb[37].mxu0  ;;  %v447_v28 = vadd.f32 %v446_v44, %v2106_v40  ;;  %v448_v29 = vpop.f32.mrb[13].mxu1 }
 0x1f6   :  { %706 = vmatmul.mubr.bf16.vlgmr.msra.gmra.mrb[48].mxu0 %v665_v2  ;;  %v603_v31 = vadd.f32 %v602_v45, %v2001_v51  ;;  %v1606_v32 = vpop.f32.mrb[38].mxu0  ;;  %v449_v35 = vadd.f32 %v448_v29, %v2108_v42  ;;  %v450_v50 = vpop.f32.mrb[14].mxu1 }
 0x1f7   :  { %v655_v38 = vmax.f32 %v611_v26, 0.0  ;;  %v614_v39 = vadd.f32 %v1606_v32, %v2001_v51  ;;  %v605_v14 = vpop.f32.mrb[39].mxu0  ;;  %715 = vmatprep.mubr.bf16.mxu0 %v1816_v46  ;;  %v483_v41 = vmax.f32 %v447_v28, 0.0  ;;  %v451_v47 = vadd.f32 %v450_v50, %v2106_v40  ;;  %v452_v49 = vpop.f32.mrb[15].mxu1 }
 0x1f8   :  { %v653_v52 = vmax.f32 %v603_v31, 0.0  ;;  %v606_v53 = vadd.f32 %v605_v14, %v2001_v51  ;;  %v484_v54 = vmax.f32 %v449_v35, 0.0  ;;  %v453_v60 = vadd.f32 %v452_v49, %v2108_v42  ;;  %v1669_v14 = vld [vmem:[#allocation2 + $0x84] ss:$8 sps:$4 sm:$0xff]   ;;  %v1673_v49 = vld [vmem:[#allocation2 + $0xa0] ss:$8 sps:$4 sm:$0xff]  }
 0x1f9   :  { %v656_v62 = vmax.f32 %v614_v39, 0.0  ;;  %v485_v63 = vmax.f32 %v451_v47, 0.0  ;;  %v1667_v39 = vld [vmem:[#allocation2 + $0x80] ss:$8 sps:$4 sm:$0xff]   ;;  %1129 = vmatprep.subr.bf16.mxu0 %v1669_v14  ;;  %v1675_v47 = vld [vmem:[#allocation2 + $0xa4] ss:$8 sps:$4 sm:$0xff]  }
 0x1fa   :  { %v654_v0 = vmax.f32 %v606_v53, 0.0  ;;  %v486_v1 = vmax.f32 %v453_v60, 0.0  ;;  %1130 = vmatpush1.bf16.msra.mxu0 %v1667_v39  ;;  %v1676_v53 = vld [vmem:[#allocation2 + $0xb0] ss:$8 sps:$4 sm:$0xff]   ;;  %v1679_v60 = vld [vmem:[#allocation2 + $0xc0] ss:$8 sps:$4 sm:$0xff]  }
 0x1fb   :  { %v668_v3 = vpack.c.bf16 %v656_v62, %v655_v38  ;;  %v2179_v4 = vpack.c.bf16 %v485_v63, %v483_v41  ;;  %v1670_v41 = vld [vmem:[#allocation2 + $0x90] ss:$8 sps:$4 sm:$0xff]   ;;  %v1684_v62 = vld [vmem:[#allocation2 + $0xd4] ss:$8 sps:$4 sm:$0xff]   ;;  %v1697_v14 = vld [vmem:[#allocation2 + $0x120] ss:$8 sps:$4 sm:$0xff]  }
 0x1fc   :  { %v667_v5 = vpack.c.bf16 %v654_v0, %v653_v52  ;;  %v1609_v6 = vpop.f32.mrb[40].mxu0  ;;  %v2181_v8 = vpack.c.bf16 %v486_v1, %v484_v54  ;;  %v1678_v52 = vld [vmem:[#allocation2 + $0xb4] ss:$8 sps:$4 sm:$0xff]   ;;  %v1681_v54 = vld [vmem:[#allocation2 + $0xc4] ss:$8 sps:$4 sm:$0xff]  }
 0x1fd   :  { %v627_v9 = vadd.f32 %v1609_v6, %v2001_v51  ;;  %v618_v10 = vpop.f32.mrb[41].mxu0  ;;  %v1682_v63 = vld [vmem:[#allocation2 + $0xd0] ss:$8 sps:$4 sm:$0xff]   ;;  %v1687_v0 = vld [vmem:[#allocation2 + $0xe4] ss:$8 sps:$4 sm:$0xff]  }
 0x1fe   :  { %716 = vmatmul.mubr.bf16.gmra.mrb[52].mxu0 %v666_v34  ;;  %v619_v11 = vadd.f32 %v618_v10, %v2001_v51  ;;  %v1610_v12 = vpop.f32.mrb[42].mxu0  ;;  %v1685_v1 = vld [vmem:[#allocation2 + $0xe0] ss:$8 sps:$4 sm:$0xff]   ;;  %v1688_v10 = vld [vmem:[#allocation2 + $0xf0] ss:$8 sps:$4 sm:$0xff]  }
 0x1ff   :  { %725 = vmatprep.mubr.bf16.mxu0 %v1816_v46  ;;  %v659_v13 = vmax.f32 %v627_v9, 0.0  ;;  %v630_v15 = vadd.f32 %v1610_v12, %v2001_v51  ;;  %v621_v18 = vpop.f32.mrb[43].mxu0 }
 0x200   :  { %v657_v19 = vmax.f32 %v619_v11, 0.0  ;;  %v622_v16 = vadd.f32 %v621_v18, %v2001_v51 }
 0x201   :  { %v660_v17 = vmax.f32 %v630_v15, 0.0 }
 0x202   :  { %v658_v22 = vmax.f32 %v622_v16, 0.0 }
 0x203   :  { %v670_v23 = vpack.c.bf16 %v660_v17, %v659_v13  ;;  %v1693_v13 = vld [vmem:[#allocation2 + $0x104] ss:$8 sps:$4 sm:$0xff]  }
 0x204   :  { %v669_v20 = vpack.c.bf16 %v658_v22, %v657_v19  ;;  %v1613_v30 = vpop.f32.mrb[44].mxu0  ;;  %v1691_v22 = vld [vmem:[#allocation2 + $0x100] ss:$8 sps:$4 sm:$0xff]  }
 0x205   :  { %v643_v2 = vadd.f32 %v1613_v30, %v2001_v51  ;;  %v634_v34 = vpop.f32.mrb[45].mxu0  ;;  %v1696_v30 = vld [vmem:[#allocation2 + $0x114] ss:$8 sps:$4 sm:$0xff]  }
 0x206   :  { %726 = vmatmul.mubr.bf16.gmra.mrb[56].mxu0 %v667_v5  ;;  %v635_v24 = vadd.f32 %v634_v34, %v2001_v51  ;;  %v1614_v44 = vpop.f32.mrb[46].mxu0 }
 0x207   :  { %735 = vmatprep.mubr.bf16.mxu0 %v1816_v46  ;;  %v663_v26 = vmax.f32 %v643_v2, 0.0  ;;  %v646_v45 = vadd.f32 %v1614_v44, %v2001_v51  ;;  %v637_v28 = vpop.f32.mrb[47].mxu0 }
 0x208   :  { %v661_v29 = vmax.f32 %v635_v24, 0.0  ;;  %v638_v31 = vadd.f32 %v637_v28, %v2001_v51  ;;  %v1672_v51 = vld [vmem:[#allocation2 + $0x94] ss:$8 sps:$4 sm:$0xff]  }
 0x209   :  { %v664_v32 = vmax.f32 %v646_v45, 0.0  ;;  %1131 = vmatprep.subr.bf16.mxu0 %v1672_v51  ;;  %v1694_v45 = vld [vmem:[#allocation2 + $0x110] ss:$8 sps:$4 sm:$0xff]  }
 0x20a   :  { %v662_v35 = vmax.f32 %v638_v31, 0.0  ;;  %1132 = vmatpush1.bf16.msra.mxu0 %v1670_v41  ;;  %v1699_v31 = vld [vmem:[#allocation2 + $0x124] ss:$8 sps:$4 sm:$0xff]  }
 0x20b   :  { %v672_v50 = vpack.c.bf16 %v664_v32, %v663_v26  ;;  %1133 = vmatprep.subr.bf16.mxu0 %v1675_v47  ;;  %v1702_v47 = vld [vmem:[#allocation2 + $0x134] ss:$8 sps:$4 sm:$0xff]  }
 0x20c   :  { %v671_v38 = vpack.c.bf16 %v662_v35, %v661_v29 }
 0x20e   :  { %736 = vmatmul.mubr.bf16.gmra.mrb[60].mxu0 %v668_v3  ;;  %v1690_v3 = vld [vmem:[#allocation2 + $0xf4] ss:$8 sps:$4 sm:$0xff]  }
 0x20f   :  { %745 = vmatprep.mubr.bf16.mxu0 %v1816_v46  ;;  %1134 = vmatpush1.bf16.msra.mxu0 %v1673_v49 }
 0x210   :  { %1135 = vmatprep.subr.bf16.mxu0 %v1678_v52 }
 0x213   :  { %1136 = vmatpush1.bf16.msra.mxu0 %v1676_v53 }
 0x214   :  { %1137 = vmatprep.subr.bf16.mxu0 %v1681_v54 }
 0x216   :  { %746 = vmatmul.mubr.bf16.gmra.mrb[64].mxu0 %v669_v20 }
 0x217   :  { %755 = vmatprep.mubr.bf16.mxu0 %v1816_v46  ;;  %1138 = vmatpush1.bf16.msra.mxu0 %v1679_v60 }
 0x218   :  { %1139 = vmatprep.subr.bf16.mxu0 %v1684_v62  ;;  %v1700_v62 = vld [vmem:[#allocation2 + $0x130] ss:$8 sps:$4 sm:$0xff]  }
 0x21b   :  { %1140 = vmatpush1.bf16.msra.mxu0 %v1682_v63 }
 0x21c   :  { %1141 = vmatprep.subr.bf16.mxu0 %v1687_v0 }
 0x21e   :  { %756 = vmatmul.mubr.bf16.gmra.mrb[68].mxu0 %v670_v23 }
 0x21f   :  { %765 = vmatprep.mubr.bf16.mxu0 %v1816_v46  ;;  %1142 = vmatpush1.bf16.msra.mxu0 %v1685_v1  ;;  %v1705_v1 = vld [vmem:[#allocation2 + $0x144] ss:$8 sps:$4 sm:$0xff]  }
 0x220   :  { %1143 = vmatprep.subr.bf16.mxu0 %v1690_v3 }
 0x223   :  { %1144 = vmatpush1.bf16.msra.mxu0 %v1688_v10 }
 0x224   :  { %1145 = vmatprep.subr.bf16.mxu0 %v1693_v13 }
 0x226   :  { %766 = vmatmul.mubr.bf16.gmra.mrb[72].mxu0 %v671_v38 }
 0x227   :  { %775 = vmatprep.mubr.bf16.mxu0 %v1816_v46  ;;  %1146 = vmatpush1.bf16.msra.mxu0 %v1691_v22 }
 0x228   :  { %1147 = vmatprep.subr.bf16.mxu0 %v1696_v30 }
 0x22b   :  { %1148 = vmatpush1.bf16.msra.mxu0 %v1694_v45 }
 0x22c   :  { %1149 = vmatprep.subr.bf16.mxu0 %v1699_v31 }
 0x22e   :  { %776 = vmatmul.mubr.bf16.gmra.mrb[76].mxu0 %v672_v50 }
 0x22f   :  { %1150 = vmatpush1.bf16.msra.mxu0 %v1697_v14 }
 0x230   :  { %1151 = vmatprep.subr.bf16.mxu0 %v1702_v47 }
 0x233   :  { %1152 = vmatpush1.bf16.msra.mxu0 %v1700_v62 }
 0x234   :  { %1153 = vmatprep.subr.bf16.mxu0 %v1705_v1 }
 0x2c9   :  { %v707_v5 = vpop.f32.mrb[48].mxu0 }
 0x2ca   :  { %v708_v6 = vadd.f32 %v707_v5, %v2106_v40  ;;  %v709_v9 = vpop.f32.mrb[49].mxu0 }
 0x2cb   :  { %v710_v11 = vadd.f32 %v709_v9, %v2108_v42  ;;  %v711_v12 = vpop.f32.mrb[50].mxu0 }
 0x2cc   :  { %v712_v15 = vadd.f32 %v711_v12, %v2106_v40  ;;  %v713_v18 = vpop.f32.mrb[51].mxu0  ;;  %v786_v16 = vmax.f32 %v708_v6, 0.0 }
 0x2cd   :  { %v714_v19 = vadd.f32 %v713_v18, %v2108_v42  ;;  %v787_v23 = vmax.f32 %v710_v11, 0.0  ;;  %v1703_v11 = vld [vmem:[#allocation2 + $0x140] ss:$8 sps:$4 sm:$0xff]  }
 0x2ce   :  { %v788_v17 = vmax.f32 %v712_v15, 0.0  ;;  %v1708_v15 = vld [vmem:[#allocation2 + $0x154] ss:$8 sps:$4 sm:$0xff]   ;;  %1154 = vmatpush1.bf16.msra.mxu0 %v1703_v11 }
 0x2cf   :  { %v789_v20 = vmax.f32 %v714_v19, 0.0  ;;  %1155 = vmatprep.subr.bf16.mxu0 %v1708_v15 }
 0x2d0   :  { %v819_v2 = vpack.c.bf16 %v788_v17, %v786_v16 }
 0x2d1   :  { %v820_v34 = vpack.c.bf16 %v789_v20, %v787_v23  ;;  %v717_v24 = vpop.f32.mrb[52].mxu0  ;;  %v1706_v23 = vld [vmem:[#allocation2 + $0x150] ss:$8 sps:$4 sm:$0xff]  }
 0x2d2   :  { %v718_v44 = vadd.f32 %v717_v24, %v2106_v40  ;;  %v719_v26 = vpop.f32.mrb[53].mxu0  ;;  %1156 = vmatpush1.bf16.msra.mxu0 %v1706_v23 }
 0x2d3   :  { %v720_v28 = vadd.f32 %v719_v26, %v2108_v42  ;;  %v721_v29 = vpop.f32.mrb[54].mxu0  ;;  %835 = vmatprep.subr.bf16.mxu1 %v820_v34 }
 0x2d4   :  { %v722_v32 = vadd.f32 %v721_v29, %v2106_v40  ;;  %v723_v35 = vpop.f32.mrb[55].mxu0  ;;  %836 = vmatpush1.bf16.msra.mxu1 %v819_v2  ;;  %v790_v38 = vmax.f32 %v718_v44, 0.0  ;;  %v1711_v2 = vld [vmem:[#allocation2 + $0x164] ss:$8 sps:$4 sm:$0xff]  }
 0x2d5   :  { %v724_v50 = vadd.f32 %v723_v35, %v2108_v42  ;;  %v791_v51 = vmax.f32 %v720_v28, 0.0  ;;  %v1709_v28 = vld [vmem:[#allocation2 + $0x160] ss:$8 sps:$4 sm:$0xff]   ;;  %1157 = vmatprep.subr.bf16.mxu0 %v1711_v2 }
 0x2d6   :  { %v792_v39 = vmax.f32 %v722_v32, 0.0  ;;  %1158 = vmatpush1.bf16.msra.mxu0 %v1709_v28 }
 0x2d7   :  { %v793_v41 = vmax.f32 %v724_v50, 0.0 }
 0x2d8   :  { %v821_v49 = vpack.c.bf16 %v792_v39, %v790_v38 }
 0x2d9   :  { %v822_v52 = vpack.c.bf16 %v793_v41, %v791_v51  ;;  %v727_v53 = vpop.f32.mrb[56].mxu0 }
 0x2da   :  { %v728_v54 = vadd.f32 %v727_v53, %v2106_v40  ;;  %v729_v60 = vpop.f32.mrb[57].mxu0 }
 0x2db   :  { %v730_v63 = vadd.f32 %v729_v60, %v2108_v42  ;;  %v731_v0 = vpop.f32.mrb[58].mxu0  ;;  %837 = vmatprep.subr.bf16.mxu1 %v822_v52 }
 0x2dc   :  { %v732_v3 = vadd.f32 %v731_v0, %v2106_v40  ;;  %v733_v5 = vpop.f32.mrb[59].mxu0  ;;  %838 = vmatpush1.bf16.msra.mxu1 %v821_v49  ;;  %v794_v9 = vmax.f32 %v728_v54, 0.0 }
 0x2dd   :  { %v734_v6 = vadd.f32 %v733_v5, %v2108_v42  ;;  %v795_v12 = vmax.f32 %v730_v63, 0.0 }
 0x2de   :  { %v796_v10 = vmax.f32 %v732_v3, 0.0 }
 0x2df   :  { %v797_v13 = vmax.f32 %v734_v6, 0.0 }
 0x2e0   :  { %v823_v18 = vpack.c.bf16 %v796_v10, %v794_v9 }
 0x2e1   :  { %v824_v19 = vpack.c.bf16 %v797_v13, %v795_v12  ;;  %v737_v16 = vpop.f32.mrb[60].mxu0 }
 0x2e2   :  { %v738_v17 = vadd.f32 %v737_v16, %v2106_v40  ;;  %v739_v22 = vpop.f32.mrb[61].mxu0 }
 0x2e3   :  { %v740_v20 = vadd.f32 %v739_v22, %v2108_v42  ;;  %v741_v30 = vpop.f32.mrb[62].mxu0  ;;  %839 = vmatprep.subr.bf16.mxu1 %v824_v19 }
 0x2e4   :  { %v742_v34 = vadd.f32 %v741_v30, %v2106_v40  ;;  %v743_v24 = vpop.f32.mrb[63].mxu0  ;;  %840 = vmatpush1.bf16.msra.mxu1 %v823_v18  ;;  %v798_v26 = vmax.f32 %v738_v17, 0.0 }
 0x2e5   :  { %v744_v44 = vadd.f32 %v743_v24, %v2108_v42  ;;  %v799_v29 = vmax.f32 %v740_v20, 0.0 }
 0x2e6   :  { %v800_v45 = vmax.f32 %v742_v34, 0.0 }
 0x2e7   :  { %v801_v31 = vmax.f32 %v744_v44, 0.0 }
 0x2e8   :  { %v825_v32 = vpack.c.bf16 %v800_v45, %v798_v26 }
 0x2e9   :  { %v826_v35 = vpack.c.bf16 %v801_v31, %v799_v29  ;;  %v747_v50 = vpop.f32.mrb[64].mxu0 }
 0x2ea   :  { %v748_v38 = vadd.f32 %v747_v50, %v2106_v40  ;;  %v749_v39 = vpop.f32.mrb[65].mxu0 }
 0x2eb   :  { %v750_v14 = vadd.f32 %v749_v39, %v2108_v42  ;;  %v751_v51 = vpop.f32.mrb[66].mxu0  ;;  %841 = vmatprep.subr.bf16.mxu1 %v826_v35 }
 0x2ec   :  { %v752_v41 = vadd.f32 %v751_v51, %v2106_v40  ;;  %v753_v47 = vpop.f32.mrb[67].mxu0  ;;  %842 = vmatpush1.bf16.msra.mxu1 %v825_v32  ;;  %v802_v52 = vmax.f32 %v748_v38, 0.0 }
 0x2ed   :  { %v754_v49 = vadd.f32 %v753_v47, %v2108_v42  ;;  %v803_v54 = vmax.f32 %v750_v14, 0.0 }
 0x2ee   :  { %v804_v53 = vmax.f32 %v752_v41, 0.0 }
 0x2ef   :  { %v805_v60 = vmax.f32 %v754_v49, 0.0 }
 0x2f0   :  { %v827_v62 = vpack.c.bf16 %v804_v53, %v802_v52 }
 0x2f1   :  { %v828_v63 = vpack.c.bf16 %v805_v60, %v803_v54  ;;  %v757_v0 = vpop.f32.mrb[68].mxu0 }
 0x2f2   :  { %v758_v1 = vadd.f32 %v757_v0, %v2106_v40  ;;  %v759_v3 = vpop.f32.mrb[69].mxu0  ;;  %v1739_v0 = vld [vmem:[#allocation2 + $0x200] ss:$8 sps:$4 sm:$0xff]  }
 0x2f3   :  { %v760_v5 = vadd.f32 %v759_v3, %v2108_v42  ;;  %v761_v6 = vpop.f32.mrb[70].mxu0  ;;  %843 = vmatprep.subr.bf16.mxu1 %v828_v63  ;;  %v1741_v63 = vld [vmem:[#allocation2 + $0x204] ss:$8 sps:$4 sm:$0xff]   ;;  %v1742_v3 = vld [vmem:[#allocation2 + $0x210] ss:$8 sps:$4 sm:$0xff]  }
 0x2f4   :  { %v762_v9 = vadd.f32 %v761_v6, %v2106_v40  ;;  %v763_v10 = vpop.f32.mrb[71].mxu0  ;;  %844 = vmatpush1.bf16.msra.mxu1 %v827_v62  ;;  %v806_v12 = vmax.f32 %v758_v1, 0.0  ;;  %v818_v62 = vld [vmem:[#allocation2 + $0x284] sm:$0xf]  ;;  %v1744_v1 = vld [vmem:[#allocation2 + $0x214] ss:$8 sps:$4 sm:$0xff]  }
 0x2f5   :  { %v764_v11 = vadd.f32 %v763_v10, %v2108_v42  ;;  %v807_v15 = vmax.f32 %v760_v5, 0.0  ;;  %v1747_v5 = vld [vmem:[#allocation2 + $0x224] ss:$8 sps:$4 sm:$0xff]   ;;  %v1745_v6 = vld [vmem:[#allocation2 + $0x220] ss:$8 sps:$4 sm:$0xff]  }
 0x2f6   :  { %v808_v13 = vmax.f32 %v762_v9, 0.0  ;;  %v1750_v9 = vld [vmem:[#allocation2 + $0x234] ss:$8 sps:$4 sm:$0xff]   ;;  %v1748_v10 = vld [vmem:[#allocation2 + $0x230] ss:$8 sps:$4 sm:$0xff]  }
 0x2f7   :  { %v809_v18 = vmax.f32 %v764_v11, 0.0  ;;  %v1753_v11 = vld [vmem:[#allocation2 + $0x244] ss:$8 sps:$4 sm:$0xff]  }
 0x2f8   :  { %v829_v19 = vpack.c.bf16 %v808_v13, %v806_v12  ;;  %v1751_v12 = vld [vmem:[#allocation2 + $0x240] ss:$8 sps:$4 sm:$0xff]   ;;  %v1756_v13 = vld [vmem:[#allocation2 + $0x254] ss:$8 sps:$4 sm:$0xff]  }
 0x2f9   :  { %v830_v16 = vpack.c.bf16 %v809_v18, %v807_v15  ;;  %v767_v17 = vpop.f32.mrb[72].mxu0  ;;  %v1754_v15 = vld [vmem:[#allocation2 + $0x250] ss:$8 sps:$4 sm:$0xff]  }
 0x2fa   :  { %v768_v22 = vadd.f32 %v767_v17, %v2106_v40  ;;  %v769_v23 = vpop.f32.mrb[73].mxu0 }
 0x2fb   :  { %v770_v20 = vadd.f32 %v769_v23, %v2108_v42  ;;  %v771_v30 = vpop.f32.mrb[74].mxu0  ;;  %845 = vmatprep.subr.bf16.mxu1 %v830_v16 }
 0x2fc   :  { %v772_v2 = vadd.f32 %v771_v30, %v2106_v40  ;;  %v773_v34 = vpop.f32.mrb[75].mxu0  ;;  %846 = vmatpush1.bf16.msra.mxu1 %v829_v19  ;;  %v810_v44 = vmax.f32 %v768_v22, 0.0  ;;  %v1757_v30 = vld [vmem:[#allocation2 + $0x260] ss:$8 sps:$4 sm:$0xff]  }
 0x2fd   :  { %v774_v24 = vadd.f32 %v773_v34, %v2108_v42  ;;  %v811_v45 = vmax.f32 %v770_v20, 0.0  ;;  %v1759_v20 = vld [vmem:[#allocation2 + $0x264] ss:$8 sps:$4 sm:$0xff]   ;;  %v1760_v34 = vld [vmem:[#allocation2 + $0x270] ss:$8 sps:$4 sm:$0xff]  }
 0x2fe   :  { %v812_v26 = vmax.f32 %v772_v2, 0.0  ;;  %v1762_v2 = vld [vmem:[#allocation2 + $0x274] ss:$8 sps:$4 sm:$0xff]  }
 0x2ff   :  { %v813_v28 = vmax.f32 %v774_v24, 0.0  ;;  %v953_v24 = vsub.s32 2, %v1992_v48 }
 0x300   :  { %v831_v29 = vpack.c.bf16 %v812_v26, %v810_v44  ;;  %v957_v44 = vsub.s32 6, %v1992_v48  ;;  %v1763_v26 = vld [vmem:[%s2268_s3] sm:$0xff]  ;;  %s1817_s3 = smov [#allocation5]  }
 0x301   :  { %v832_v31 = vpack.c.bf16 %v813_v28, %v811_v45  ;;  %v777_v32 = vpop.f32.mrb[76].mxu0  ;;  %v954_v45 = vrot.slane %v1763_v26, %v953_v24  ;;  %s1447_s16 = sshll.u32 %s1817_s3, 4  ;;  %s1448_s16 = int_to_ptr.vmem [resolvable:$true] %s1447_s16 }
 0x302   :  { %v778_v35 = vadd.f32 %v777_v32, %v2106_v40  ;;  %v779_v50 = vpop.f32.mrb[77].mxu0  ;;  %v958_v28 = vrot.slane %v1763_v26, %v957_v44  ;;  %s1786_s17 = scalar_lea.vmem %s1448_s16, 64  ;;  %p1791_p9 = scmp.lt.s32.totalorder %s1448_s16, %s1448_s16 }
 0x303   :  { %v780_v38 = vadd.f32 %v779_v50, %v2108_v42  ;;  %v781_v39 = vpop.f32.mrb[78].mxu0  ;;  %847 = vmatprep.subr.bf16.mxu1 %v832_v31  ;;  %p1787_p8 = scmp.ne.s32.totalorder %s1448_s16, %s1786_s17  ;;  %p1792_p10 = scmp.lt.s32.totalorder %s1786_s17, %s1786_s17 }
 0x304   :  { %v782_v14 = vadd.f32 %v781_v39, %v2106_v40  ;;  %v783_v51 = vpop.f32.mrb[79].mxu0  ;;  %848 = vmatpush1.bf16.msra.mxu1 %v831_v29  ;;  %v814_v47 = vmax.f32 %v778_v35, 0.0  ;;  %v1714_v40 = vld [vmem:[#allocation2 + $0x174] ss:$8 sps:$4 sm:$0xff]   ;;  %v964_v29 = vrot.slane %v954_v45, %v953_v24  ;;  %v968_v31 = vrot.slane %v958_v28, %v953_v24 }
 0x305   :  { %v784_v41 = vadd.f32 %v783_v51, %v2108_v42  ;;  %v815_v52 = vmax.f32 %v780_v38, 0.0  ;;  %v1712_v42 = vld [vmem:[#allocation2 + $0x170] ss:$8 sps:$4 sm:$0xff]   ;;  %1159 = vmatprep.subr.bf16.mxu0 %v1714_v40  ;;  %p1793_p11 = por %p1792_p10, %p1791_p9 }
 0x306   :  { %v816_v49 = vmax.f32 %v782_v14, 0.0  ;;  %1160 = vmatpush1.bf16.msra.mxu0 %v1712_v42 }
 0x307   :  { %v817_v53 = vmax.f32 %v784_v41, 0.0  ;;  %p1794_p12 = pnand %p1793_p11, %p1787_p8 }
 0x308   :  { %v833_v54 = vpack.c.bf16 %v816_v49, %v814_v47 }
 0x309   :  { %v834_v60 = vpack.c.bf16 %v817_v53, %v815_v52 }
 0x30b   :  { %849 = vmatprep.subr.bf16.mxu1 %v834_v60  ;;  %v1216_v60 = vsub.s32 7, %v1992_v48 }
 0x30c   :  { %850 = vmatpush1.bf16.msra.mxu1 %v833_v54  ;;  %v1212_v54 = vsub.s32 3, %v1992_v48 }
 0x30d   :  { %876 = vmatprep.subr.bf16.mxu1 %v2116_v37  ;;  %v1717_v37 = vld [vmem:[#allocation2 + $0x184] ss:$8 sps:$4 sm:$0xff]  }
 0x30f   :  { %868 = vmatmul.mubr.bf16.vlgmr.msra.gmra.mrb[16].mxu1 %v818_v62  ;;  %v1213_v62 = vrot.slane %v1763_v26, %v1212_v54 }
 0x310   :  { %877 = vmatpush1.bf16.msra.mxu1 %v2114_v7  ;;  %908 = vmatprep.mubr.bf16.mxu1 %v1816_v46  ;;  %v487_v46 = vld [vmem:[#allocation2 + $0x280] sm:$0xf] }
 0x311   :  { %878 = vmatprep.subr.bf16.mxu1 %v2124_v59  ;;  %v1715_v7 = vld [vmem:[#allocation2 + $0x180] ss:$8 sps:$4 sm:$0xff]   ;;  %v1718_v59 = vld [vmem:[#allocation2 + $0x190] ss:$8 sps:$4 sm:$0xff]   ;;  %v1223_v40 = vrot.slane %v1213_v62, %v1212_v54 }
 0x314   :  { %879 = vmatpush1.bf16.msra.mxu1 %v2122_v58  ;;  %v1720_v58 = vld [vmem:[#allocation2 + $0x194] ss:$8 sps:$4 sm:$0xff]  }
 0x315   :  { %880 = vmatprep.subr.bf16.mxu1 %v2138_v27  ;;  %v1726_v27 = vld [vmem:[#allocation2 + $0x1b4] ss:$8 sps:$4 sm:$0xff]  }
 0x318   :  { %881 = vmatpush1.bf16.msra.mxu1 %v2134_v21  ;;  %v1723_v21 = vld [vmem:[#allocation2 + $0x1a4] ss:$8 sps:$4 sm:$0xff]  }
 0x319   :  { %882 = vmatprep.subr.bf16.mxu1 %v2154_v57  ;;  %v1732_v57 = vld [vmem:[#allocation2 + $0x1d4] ss:$8 sps:$4 sm:$0xff]  }
 0x31c   :  { %883 = vmatpush1.bf16.msra.mxu1 %v2150_v55  ;;  %v1729_v55 = vld [vmem:[#allocation2 + $0x1c4] ss:$8 sps:$4 sm:$0xff]  }
 0x31d   :  { %884 = vmatprep.subr.bf16.mxu1 %v2140_v33  ;;  %v1724_v33 = vld [vmem:[#allocation2 + $0x1b0] ss:$8 sps:$4 sm:$0xff]  }
 0x320   :  { %885 = vmatpush1.bf16.msra.mxu1 %v2136_v25  ;;  %v1721_v25 = vld [vmem:[#allocation2 + $0x1a0] ss:$8 sps:$4 sm:$0xff]  }
 0x321   :  { %886 = vmatprep.subr.bf16.mxu1 %v2156_v61  ;;  %v1730_v61 = vld [vmem:[#allocation2 + $0x1d0] ss:$8 sps:$4 sm:$0xff]  }
 0x324   :  { %887 = vmatpush1.bf16.msra.mxu1 %v2152_v56  ;;  %v1727_v56 = vld [vmem:[#allocation2 + $0x1c0] ss:$8 sps:$4 sm:$0xff]  }
 0x325   :  { %888 = vmatprep.subr.bf16.mxu1 %v2168_v43  ;;  %v1733_v43 = vld [vmem:[#allocation2 + $0x1e0] ss:$8 sps:$4 sm:$0xff]  }
 0x328   :  { %889 = vmatpush1.bf16.msra.mxu1 %v2166_v36  ;;  %v1735_v36 = vld [vmem:[#allocation2 + $0x1e4] ss:$8 sps:$4 sm:$0xff]  }
 0x329   :  { %890 = vmatprep.subr.bf16.mxu1 %v2181_v8  ;;  %v1736_v8 = vld [vmem:[#allocation2 + $0x1f0] ss:$8 sps:$4 sm:$0xff]  }
 0x32c   :  { %891 = vmatpush1.bf16.msra.mxu1 %v2179_v4  ;;  %v1738_v4 = vld [vmem:[#allocation2 + $0x1f4] ss:$8 sps:$4 sm:$0xff]  }
 0x32d   :  { %1388 = vmatprep.subr.bf16.mxu1 %v1717_v37 }
 0x32f   :  { %909 = vmatmul.mubr.bf16.vlgmr.msra.gmra.mrb[16].mxu1 %v487_v46  ;;  %v1217_v46 = vrot.slane %v1763_v26, %v1216_v60 }
 0x330   :  { %1389 = vmatpush1.bf16.msra.mxu1 %v1715_v7 }
 0x331   :  { %1390 = vmatprep.subr.bf16.mxu1 %v1720_v58  ;;  %v1227_v42 = vrot.slane %v1217_v46, %v1212_v54 }
 0x334   :  { %1391 = vmatpush1.bf16.msra.mxu1 %v1718_v59 }
 0x335   :  { %1392 = vmatprep.subr.bf16.mxu1 %v1723_v21 }
 0x338   :  { %1393 = vmatpush1.bf16.msra.mxu1 %v1721_v25 }
 0x339   :  { %1394 = vmatprep.subr.bf16.mxu1 %v1726_v27 }
 0x33c   :  { %1395 = vmatpush1.bf16.msra.mxu1 %v1724_v33 }
 0x33d   :  { %1396 = vmatprep.subr.bf16.mxu1 %v1729_v55 }
 0x340   :  { %1397 = vmatpush1.bf16.msra.mxu1 %v1727_v56 }
 0x341   :  { %1398 = vmatprep.subr.bf16.mxu1 %v1732_v57 }
 0x344   :  { %1399 = vmatpush1.bf16.msra.mxu1 %v1730_v61 }
 0x345   :  { %1400 = vmatprep.subr.bf16.mxu1 %v1735_v36 }
 0x348   :  { %1401 = vmatpush1.bf16.msra.mxu1 %v1733_v43 }
 0x349   :  { %1402 = vmatprep.subr.bf16.mxu1 %v1738_v4 }
 0x34c   :  { %1403 = vmatpush1.bf16.msra.mxu1 %v1736_v8 }
 0x34d   :  { %1404 = vmatprep.subr.bf16.mxu1 %v1741_v63 }
 0x350   :  { %1405 = vmatpush1.bf16.msra.mxu1 %v1739_v0 }
 0x351   :  { %1406 = vmatprep.subr.bf16.mxu1 %v1744_v1 }
 0x354   :  { %1407 = vmatpush1.bf16.msra.mxu1 %v1742_v3 }
 0x355   :  { %1408 = vmatprep.subr.bf16.mxu1 %v1747_v5 }
 0x358   :  { %1409 = vmatpush1.bf16.msra.mxu1 %v1745_v6 }
 0x359   :  { %1410 = vmatprep.subr.bf16.mxu1 %v1750_v9 }
 0x35c   :  { %1411 = vmatpush1.bf16.msra.mxu1 %v1748_v10 }
 0x35d   :  { %1412 = vmatprep.subr.bf16.mxu1 %v1753_v11 }
 0x360   :  { %1413 = vmatpush1.bf16.msra.mxu1 %v1751_v12 }
 0x361   :  { %1414 = vmatprep.subr.bf16.mxu1 %v1756_v13 }
 0x364   :  { %1415 = vmatpush1.bf16.msra.mxu1 %v1754_v15 }
 0x365   :  { %1416 = vmatprep.subr.bf16.mxu1 %v1759_v20 }
 0x368   :  { %1417 = vmatpush1.bf16.msra.mxu1 %v1757_v30 }
 0x369   :  { %1418 = vmatprep.subr.bf16.mxu1 %v1762_v2 }
 0x36c   :  { %1419 = vmatpush1.bf16.msra.mxu1 %v1760_v34 }
 0x402   :  { %v910_v18 = vpop.f32.mrb[16].mxu1 }
 0x403   :  { %v912_v19 = vpop.f32.mrb[17].mxu1  ;;  %v949_v22 = vpack.c.bf16 %v910_v18, %v910_v18 }
 0x404   :  { %v950_v16 = vpack.c.bf16 %v912_v19, %v912_v19  ;;  %v914_v17 = vpop.f32.mrb[18].mxu1 }
 0x405   :  { %v915_v23 = vpop.f32.mrb[19].mxu1 }
 0x406   :  { %1161 = vmatprep.mubr.bf16.mxu0 %v950_v16 }
 0x407   :  { %1162 = vmatmul.mubr.bf16.vlgmr.msra.gmra.mrb[80].mxu0 %v949_v22 }
 0x4da   :  { %v1163_v32 = vpop.f32.mrb[80].mxu0 }
 0x4db   :  { %v1164_v35 = vadd.f32 %v1163_v32, %v964_v29  ;;  %v1165_v50 = vpop.f32.mrb[81].mxu0 }
 0x4dc   :  { %v1166_v38 = vadd.f32 %v1165_v50, %v968_v31  ;;  %v1167_v39 = vpop.f32.mrb[82].mxu0 }
 0x4dd   :  { %vm1170_vm3 = vcmp.ge.f32.partialorder %v1164_v35, 0.0  ;;  %v1172_v14 = vmul.f32 0.01, %v1164_v35  ;;  %v1168_v51 = vpop.f32.mrb[83].mxu0 }
 0x4de   :  { %vm1171_vm4 = vcmp.ge.f32.partialorder %v1166_v38, 0.0  ;;  %v1173_v41 = vmul.f32 0.01, %v1166_v38 }
 0x4df   :  { %v1174_v47 = vsel %vm1170_vm3, %v1164_v35, %v1172_v14 }
 0x4e0   :  { %v1175_v49 = vsel %vm1171_vm4, %v1166_v38, %v1173_v41  ;;  %v1208_v53 = vpack.c.bf16 %v1174_v47, %v1174_v47 }
 0x4e1   :  { %v1209_v52 = vpack.c.bf16 %v1175_v49, %v1175_v49 }
 0x4e3   :  { %1420 = vmatprep.mubr.bf16.mxu1 %v1209_v52 }
 0x4e4   :  { %1421 = vmatmul.mubr.bf16.vlgmr.msra.gmra.mrb[20].mxu1 %v1208_v53 }
 0x5b7   :  { %v1422_v7 = vpop.f32.mrb[20].mxu1 }
 0x5b8   :  { %v1423_v37 = vadd.f32 %v1422_v7, %v1223_v40  ;;  %v1424_v58 = vpop.f32.mrb[21].mxu1 }
 0x5b9   :  { %v1425_v59 = vadd.f32 %v1424_v58, %v1227_v42  ;;  %v1426_v21 = vpop.f32.mrb[22].mxu1 }
 0x5ba   :  { %v1427_v25 = vpop.f32.mrb[23].mxu1 }
 0x5bb   :  { %v1431_v27 = vcombine.low %v1423_v37, %v1425_v59 }
 0x5bd   :  { %1554 = vst.sshfl [vmem:[#allocation5] sm:$0x33 pattern:$0x76325410] %v1431_v27 }
 0x5be   :  { %1797 = shalt.err (!%p1794_p12)
}
 0x5bf   :  { %s1798_s20 = scalar_lea.hbm %s2269_s4, 64 }
 0x5c0   :  { %p1799_p13 = scmp.ne.s32.totalorder %s2269_s4, %s1798_s20  ;;  %p1802_p0 = scmp.lt.u32.totalorder %s1798_s20, %s2269_s4 }
 0x5c2   :  { %p1804_p1 = pnand %p1802_p0, %p1799_p13 }
 0x5c4   :  { %1807 = shalt.err (!%p1804_p1)
}
 0x5c5   :  { %1450 = dma.vmem_to_hbm [thread:$0]  %s1448_s16, 64, %s2269_s4, [#allocation4]  }
 0x5c6   :  { %1810 = dma.done.wait [#allocation4], 64  }
 0x5c7   :  { %1811 = vsyncadd [#allocation4], 4294967232 }
 0x5c8   :  { %1454 = vsyncpa [#allocation3], 1 }
 0x5c9   :  { %1455 = vsyncpa [#allocation4], 1 }

</bundles_post_ra>
